<compile_context>
chip_gen: v5e
topology: v5e:2x2
jax: 0.10.0
libtpu: 0.0.40
codegen_flags: <defaults>
</compile_context>

<pallas_src>
import functools

import jax
import jax.numpy as jnp
from jax import lax
from jax.experimental import pallas as pl
from jax.experimental.pallas import tpu as pltpu

EPS = 1e-5          # nn.InstanceNorm1d default
_LANE = 128


# --------------------------------------------------------------------------
# Kernels
# --------------------------------------------------------------------------
def add_norm_kernel(x_ref, y_ref, gamma_ref, beta_ref, o_ref):
    """Single-pass kernel: whole N is resident in the tile."""
    n = x_ref.shape[1]
    inv_n = jnp.float32(1.0 / n)
    added = x_ref[...].astype(jnp.float32) + y_ref[...].astype(jnp.float32)
    # One-pass stats (E[x^2] - mean^2); clamp guards against cancellation.
    s1 = jnp.sum(added, axis=1, keepdims=True)            # (Bblk, 1, tD)
    s2 = jnp.sum(added * added, axis=1, keepdims=True)    # (Bblk, 1, tD)
    mean = s1 * inv_n
    var = jnp.maximum(s2 * inv_n - mean * mean, 0.0)
    inv = lax.rsqrt(var + EPS)
    gamma = gamma_ref[...][None]                           # (1, 1, tD)
    beta = beta_ref[...][None]                             # (1, 1, tD)
    scale = inv * gamma                                    # fold gamma into rsqrt
    shift = beta - mean * scale
    # Recompute x+y for the write (free in spare vld/VALU slots on a DMA-bound
    # kernel) instead of keeping the f32 `added` tile live across the stats.
    o_ref[...] = ((x_ref[...].astype(jnp.float32) +
                   y_ref[...].astype(jnp.float32)) * scale + shift).astype(o_ref.dtype)


def add_norm_twopass_kernel(x_ref, y_ref, gamma_ref, beta_ref, o_ref,
                            s1_ref, s2_ref, *, n_true):
    """Long-N fallback: pass 0 accumulates stats over N tiles, pass 1 normalizes."""
    p = pl.program_id(2)   # 0 = stats pass, 1 = normalize pass
    n = pl.program_id(3)   # N-tile index

    @pl.when((p == 0) & (n == 0))
    def _():
        s1_ref[...] = jnp.zeros_like(s1_ref)
        s2_ref[...] = jnp.zeros_like(s2_ref)

    added = x_ref[...].astype(jnp.float32) + y_ref[...].astype(jnp.float32)

    @pl.when(p == 0)
    def _():
        s1_ref[...] += jnp.sum(added, axis=1, keepdims=True)
        s2_ref[...] += jnp.sum(added * added, axis=1, keepdims=True)

    @pl.when(p == 1)
    def _():
        inv_n = jnp.float32(1.0 / n_true)   # true N (zero-padded rows add 0 to sums)
        mean = s1_ref[...] * inv_n
        var = jnp.maximum(s2_ref[...] * inv_n - mean * mean, 0.0)
        inv = lax.rsqrt(var + EPS)
        gamma = gamma_ref[...][None]
        beta = beta_ref[...][None]
        scale = inv * gamma
        shift = beta - mean * scale
        o_ref[...] = (added * scale + shift).astype(o_ref.dtype)


# --------------------------------------------------------------------------
# Tiling helpers
# --------------------------------------------------------------------------
def _round_up(x, m):
    return -(-x // m) * m


def _divisors_desc(n):
    return [d for d in range(n, 0, -1) if n % d == 0]


def _vmem_budget_and_limit():
    """Generation-aware tile budget and scoped-VMEM limit."""
    cap = 64 * 1024 * 1024   # conservative default (v7x per-TC physical VMEM)
    try:
        info = pltpu.get_tpu_info()
        cap = int(getattr(info, "vmem_capacity_bytes", cap)) or cap
    except Exception:
        pass
    budget = int(cap * 0.65)   # double-buffered tiles + f32 temporaries
    limit = int(cap * 0.75)    # scoped-VMEM limit passed to Mosaic
    return budget, limit


def _choose_tiles(B, N, D, itemsize, budget):
    """Pick (bblk, td) for the single-pass kernel, or None -> use the fallback."""
    per_elem = 6 * itemsize + 8   # x/y/out double-buffered + ~1 f32 temp

    def cost(bblk, td):
        return bblk * N * td * per_elem

    # Channel tiling is only legal when D is a multiple of 128 (lane rule);
    # otherwise a full-D block (block dim == array dim) is always legal.
    if D % _LANE == 0:
        td = _LANE
        for mult in _divisors_desc(D // _LANE):
            cand = mult * _LANE
            if cost(1, cand) <= budget:
                td = cand
                break
    else:
        td = D

    if cost(1, td) > budget:
        return None   # even one (1, N, td) tile does not fit -> two-pass fallback

    bblk = 1
    for b in _divisors_desc(B):
        if cost(b, td) <= budget:
            bblk = b
            break

    # v7x megacore: make sure there are >= 2 parallel grid steps when possible.
    if (D // td) * (B // bblk) < 2:
        if B >= 2:
            bblk = max(d for d in _divisors_desc(B) if d < B)
        elif D % _LANE == 0 and D // _LANE >= 2:
            td = max(m * _LANE for m in _divisors_desc(D // _LANE) if m * _LANE < D)
    return bblk, td


def _choose_fallback_tiles(N, D, itemsize, budget):
    """Pick (td, tn, n_pad) for the two-pass long-N kernel."""
    per_elem = 6 * itemsize + 8
    td = _LANE if D % _LANE == 0 else D
    max_tn = budget // (per_elem * td)
    max_tn = max(8, (max_tn // 8) * 8)
    # Prefer an N tile that divides N exactly (no padding needed).
    tn = None
    cand = min(max_tn, (N // 8) * 8)
    while cand >= 8:
        if N % cand == 0:
            tn = cand
            break
        cand -= 8
    if tn is None:
        tn = max_tn
    n_pad = _round_up(N, tn)
    return td, tn, n_pad


# --------------------------------------------------------------------------
# Wrapper
# --------------------------------------------------------------------------
def add_and_normalize(input1, input2, gamma, beta, *, vmem_budget=None):
    """Pallas implementation of Add_And_Normalization_Module.forward."""
    B, N, D = input1.shape
    out_dtype = input1.dtype
    itemsize = jnp.dtype(input1.dtype).itemsize

    budget, vmem_limit = _vmem_budget_and_limit()
    if vmem_budget is not None:        # test hook: force the fallback path
        budget = vmem_budget

    gamma2d = gamma.reshape(1, D).astype(jnp.float32)
    beta2d = beta.reshape(1, D).astype(jnp.float32)

    tiles = _choose_tiles(B, N, D, itemsize, budget)

    if tiles is not None:
        # ---------------- single-pass kernel (common case) ----------------
        bblk, td = tiles
        cost = pl.CostEstimate(
            flops=int(6 * B * N * D),
            transcendentals=int(B * D),
            bytes_accessed=int(3 * B * N * D * itemsize + 8 * D),
        )
        return pl.pallas_call(
            add_norm_kernel,
            out_shape=jax.ShapeDtypeStruct((B, N, D), out_dtype),
            grid_spec=pltpu.PrefetchScalarGridSpec(
                num_scalar_prefetch=0,
                grid=(D // td, B // bblk),          # D outer: gamma/beta stay resident
                in_specs=[
                    pl.BlockSpec((bblk, N, td), lambda d, b: (b, 0, d)),
                    pl.BlockSpec((bblk, N, td), lambda d, b: (b, 0, d)),
                    pl.BlockSpec((1, td), lambda d, b: (0, d)),
                    pl.BlockSpec((1, td), lambda d, b: (0, d)),
                ],
                out_specs=pl.BlockSpec((bblk, N, td), lambda d, b: (b, 0, d)),
            ),
            compiler_params=pltpu.CompilerParams(
                dimension_semantics=("parallel", "parallel"),
                vmem_limit_bytes=vmem_limit,
            ),
            cost_estimate=cost,
        )(input1, input2, gamma2d, beta2d)

    # ---------------- long-N fallback: two-pass over N tiles ----------------
    td, tn, n_pad = _choose_fallback_tiles(N, D, itemsize, budget)
    x, y = input1, input2
    if n_pad != N:
        # Zero-padded rows contribute 0 to s1/s2, stats stay exact (divide by true N).
        pad = ((0, 0), (0, n_pad - N), (0, 0))
        x = jnp.pad(x, pad)
        y = jnp.pad(y, pad)
    nn = n_pad // tn
    kernel = functools.partial(add_norm_twopass_kernel, n_true=N)
    cost = pl.CostEstimate(
        flops=int(8 * B * n_pad * D),
        transcendentals=int(B * D),
        bytes_accessed=int(5 * B * n_pad * D * itemsize + 8 * D),
    )
    out = pl.pallas_call(
        kernel,
        out_shape=jax.ShapeDtypeStruct((B, n_pad, D), out_dtype),
        grid_spec=pltpu.PrefetchScalarGridSpec(
            num_scalar_prefetch=0,
            grid=(D // td, B, 2, nn),
            in_specs=[
                pl.BlockSpec((1, tn, td), lambda d, b, p, n: (b, n, d)),
                pl.BlockSpec((1, tn, td), lambda d, b, p, n: (b, n, d)),
                pl.BlockSpec((1, td), lambda d, b, p, n: (0, d)),
                pl.BlockSpec((1, td), lambda d, b, p, n: (0, d)),
            ],
            # During pass 0 every step maps to block (b, 0, d) and the kernel
            # never writes it, so no garbage is flushed; pass 1 writes each
            # block exactly once before its index changes.
            out_specs=pl.BlockSpec((1, tn, td), lambda d, b, p, n: (b, p * n, d)),
            scratch_shapes=[
                pltpu.VMEM((1, 1, td), jnp.float32),   # s1
                pltpu.VMEM((1, 1, td), jnp.float32),   # s2
            ],
        ),
        compiler_params=pltpu.CompilerParams(
            dimension_semantics=("parallel", "parallel", "arbitrary", "arbitrary"),
            vmem_limit_bytes=vmem_limit,
        ),
        cost_estimate=cost,
    )(x, y, gamma2d, beta2d)
    return out[:, :N, :] if n_pad != N else out


# --------------------------------------------------------------------------
# Reference + test
# --------------------------------------------------------------------------
def reference(input1, input2, gamma, beta):
    added = (input1 + input2).astype(jnp.float32)
    mean = jnp.mean(added, axis=1, keepdims=True)
    var = jnp.mean((added - mean) ** 2, axis=1, keepdims=True)
    normed = (added - mean) * lax.rsqrt(var + EPS)
    return (normed * gamma[None, None, :] + beta[None, None, :]).astype(input1.dtype)


if __name__ == "__main__":
    key = jax.random.PRNGKey(0)
    B, N, D = 2, 8, 32   # batch, problem (seq), embedding_dim

    k1, k2 = jax.random.split(key)
    input1 = jax.random.normal(k1, (B, N, D), dtype=jnp.float32)
    input2 = jax.random.normal(k2, (B, N, D), dtype=jnp.float32)

    # nn.InstanceNorm1d(embedding_dim, affine=True) init: weight=1, bias=0
    gamma = jnp.ones((D,), dtype=jnp.float32)
    beta = jnp.zeros((D,), dtype=jnp.float32)

    out = jax.block_until_ready(add_and_normalize(input1, input2, gamma, beta))
    ref = reference(input1, input2, gamma, beta)
    assert out.shape == (B, N, D)
    assert jnp.allclose(out, ref, atol=1e-4, rtol=1e-5)

    # Also exercise the long-N two-pass fallback by forcing a tiny tiling
    # budget (the compiler VMEM limit itself stays generation-based).
    B2, N2, D2 = 2, 64, 32
    k3, k4 = jax.random.split(k2)
    a = jax.random.normal(k3, (B2, N2, D2), dtype=jnp.float32)
    b = jax.random.normal(k4, (B2, N2, D2), dtype=jnp.float32)
    g2 = 1.0 + 0.1 * jax.random.normal(k1, (D2,), dtype=jnp.float32)
    bt2 = 0.1 * jax.random.normal(k2, (D2,), dtype=jnp.float32)
    out2 = jax.block_until_ready(
        add_and_normalize(a, b, g2, bt2, vmem_budget=16 * 1024))
    ref2 = reference(a, b, g2, bt2)
    assert out2.shape == (B2, N2, D2)
    assert jnp.allclose(out2, ref2, atol=1e-4, rtol=1e-5)

    print("KERNEL_OK")
</pallas_src>

<mosaic_0001>
module attributes {stable_mosaic.version = 11 : i64} {
  func.func @add_norm_kernel(%arg0: i32, %arg1: i32, %arg2: memref<1x8x32xf32, #tpu.memory_space<vmem>>, %arg3: memref<1x8x32xf32, #tpu.memory_space<vmem>>, %arg4: memref<1x32xf32, #tpu.memory_space<vmem>>, %arg5: memref<1x32xf32, #tpu.memory_space<vmem>>, %arg6: memref<1x8x32xf32, #tpu.memory_space<vmem>>) attributes {dimension_semantics = [#tpu.dimension_semantics<parallel>, #tpu.dimension_semantics<parallel>], iteration_bounds = array<i64: 1, 2>, scalar_prefetch = 0 : i64, scratch_operands = 0 : i64, tpu.core_type = #tpu.core_type<tc>, window_params = [{transform_indices = @transform_0, window_bounds = array<i64: 1, 8, 32>}, {transform_indices = @transform_1, window_bounds = array<i64: 1, 8, 32>}, {transform_indices = @transform_2, window_bounds = array<i64: 1, 32>}, {transform_indices = @transform_3, window_bounds = array<i64: 1, 32>}, {transform_indices = @transform_4, window_bounds = array<i64: 1, 8, 32>}]} {
    %c0 = arith.constant 0 : index
    %c0_0 = arith.constant 0 : index
    %c0_1 = arith.constant 0 : index
    %0 = vector.load %arg2[%c0, %c0_0, %c0_1] : memref<1x8x32xf32, #tpu.memory_space<vmem>>, vector<1x8x32xf32>
    %c0_2 = arith.constant 0 : index
    %c0_3 = arith.constant 0 : index
    %c0_4 = arith.constant 0 : index
    %1 = vector.load %arg3[%c0_2, %c0_3, %c0_4] : memref<1x8x32xf32, #tpu.memory_space<vmem>>, vector<1x8x32xf32>
    %2 = arith.addf %0, %1 : vector<1x8x32xf32>
    %cst = arith.constant dense<0.000000e+00> : vector<1x32xf32>
    %3 = vector.multi_reduction <add>, %2, %cst [1] : vector<1x8x32xf32> to vector<1x32xf32>
    %4 = vector.shape_cast %3 : vector<1x32xf32> to vector<1x1x32xf32>
    %5 = arith.mulf %2, %2 : vector<1x8x32xf32>
    %cst_5 = arith.constant dense<0.000000e+00> : vector<1x32xf32>
    %6 = vector.multi_reduction <add>, %5, %cst_5 [1] : vector<1x8x32xf32> to vector<1x32xf32>
    %7 = vector.shape_cast %6 : vector<1x32xf32> to vector<1x1x32xf32>
    %cst_6 = arith.constant 1.250000e-01 : f32
    %8 = vector.broadcast %cst_6 : f32 to vector<1x1x32xf32>
    %9 = arith.mulf %4, %8 : vector<1x1x32xf32>
    %cst_7 = arith.constant 1.250000e-01 : f32
    %10 = vector.broadcast %cst_7 : f32 to vector<1x1x32xf32>
    %11 = arith.mulf %7, %10 : vector<1x1x32xf32>
    %12 = arith.mulf %9, %9 : vector<1x1x32xf32>
    %13 = arith.subf %11, %12 : vector<1x1x32xf32>
    %cst_8 = arith.constant 0.000000e+00 : f32
    %14 = vector.broadcast %cst_8 : f32 to vector<1x1x32xf32>
    %15 = arith.maximumf %13, %14 : vector<1x1x32xf32>
    %cst_9 = arith.constant 9.99999974E-6 : f32
    %16 = vector.broadcast %cst_9 : f32 to vector<1x1x32xf32>
    %17 = arith.addf %15, %16 : vector<1x1x32xf32>
    %18 = math.rsqrt %17 : vector<1x1x32xf32>
    %c0_10 = arith.constant 0 : index
    %c0_11 = arith.constant 0 : index
    %19 = vector.load %arg4[%c0_10, %c0_11] : memref<1x32xf32, #tpu.memory_space<vmem>>, vector<1x32xf32>
    %20 = vector.shape_cast %19 : vector<1x32xf32> to vector<1x1x32xf32>
    %c0_12 = arith.constant 0 : index
    %c0_13 = arith.constant 0 : index
    %21 = vector.load %arg5[%c0_12, %c0_13] : memref<1x32xf32, #tpu.memory_space<vmem>>, vector<1x32xf32>
    %22 = vector.shape_cast %21 : vector<1x32xf32> to vector<1x1x32xf32>
    %23 = arith.mulf %18, %20 : vector<1x1x32xf32>
    %24 = arith.mulf %9, %23 : vector<1x1x32xf32>
    %25 = arith.subf %22, %24 : vector<1x1x32xf32>
    %c0_14 = arith.constant 0 : index
    %c0_15 = arith.constant 0 : index
    %c0_16 = arith.constant 0 : index
    %26 = vector.load %arg2[%c0_14, %c0_15, %c0_16] : memref<1x8x32xf32, #tpu.memory_space<vmem>>, vector<1x8x32xf32>
    %c0_17 = arith.constant 0 : index
    %c0_18 = arith.constant 0 : index
    %c0_19 = arith.constant 0 : index
    %27 = vector.load %arg3[%c0_17, %c0_18, %c0_19] : memref<1x8x32xf32, #tpu.memory_space<vmem>>, vector<1x8x32xf32>
    %28 = arith.addf %26, %27 : vector<1x8x32xf32>
    %29 = vector.broadcast %23 : vector<1x1x32xf32> to vector<1x8x32xf32>
    %30 = arith.mulf %28, %29 : vector<1x8x32xf32>
    %31 = vector.broadcast %25 : vector<1x1x32xf32> to vector<1x8x32xf32>
    %32 = arith.addf %30, %31 : vector<1x8x32xf32>
    %c0_20 = arith.constant 0 : index
    %c0_21 = arith.constant 0 : index
    %c0_22 = arith.constant 0 : index
    %33 = vector.load %arg6[%c0_20, %c0_21, %c0_22] : memref<1x8x32xf32, #tpu.memory_space<vmem>>, vector<1x8x32xf32>
    tpu.vector_store %arg6[%c0_20, %c0_21, %c0_22], %32 {strides = array<i32>} : memref<1x8x32xf32, #tpu.memory_space<vmem>>, vector<1x8x32xf32>,
    return
  }
  func.func @transform_0(%arg0: i32, %arg1: i32) -> (i32, i32, i32) {
    %c0_i32 = arith.constant 0 : i32
    %c0_i32_0 = arith.constant 0 : i32
    return %arg1, %c0_i32, %arg0 : i32, i32, i32
  }
  func.func @transform_1(%arg0: i32, %arg1: i32) -> (i32, i32, i32) {
    %c0_i32 = arith.constant 0 : i32
    %c0_i32_0 = arith.constant 0 : i32
    return %arg1, %c0_i32, %arg0 : i32, i32, i32
  }
  func.func @transform_2(%arg0: i32, %arg1: i32) -> (i32, i32) {
    %c0_i32 = arith.constant 0 : i32
    %c0_i32_0 = arith.constant 0 : i32
    return %c0_i32, %arg0 : i32, i32
  }
  func.func @transform_3(%arg0: i32, %arg1: i32) -> (i32, i32) {
    %c0_i32 = arith.constant 0 : i32
    %c0_i32_0 = arith.constant 0 : i32
    return %c0_i32, %arg0 : i32, i32
  }
  func.func @transform_4(%arg0: i32, %arg1: i32) -> (i32, i32, i32) {
    %c0_i32 = arith.constant 0 : i32
    %c0_i32_0 = arith.constant 0 : i32
    return %arg1, %c0_i32, %arg0 : i32, i32, i32
  }
}

</mosaic_0001>

<bundles_post_ra>
// kernel: tpu_custom_call.1
= control target key start
LH: loop header
LB: loop body
LE: loop exit
PB: predicated region body
PF: predicated region fallthrough
CT: control target
= control target key end

     0   :  { %9 = vsyncpa [#allocation3], 0  ;;  %s896_s0 = inlined_call_operand.hbm [shape: f32[2,8,32], index: 0, kind: input, shape index: {}]   ;;  %s897_s1 = inlined_call_operand.hbm [shape: f32[2,8,32], index: 1, kind: input, shape index: {}]   ;;  %s898_s2 = inlined_call_operand.vmem [shape: f32[1,32], index: 2, kind: input, shape index: {}]   ;;  %s899_s3 = inlined_call_operand.vmem [shape: f32[1,32], index: 3, kind: input, shape index: {}]   ;;  %s900_s4 = inlined_call_operand.hbm [shape: f32[2,8,32], index: 4, kind: output, shape index: {}]  }
   0x1   :  { %11 = vsyncpa [#allocation3 + $0x1], 0 }
   0x2   :  { %12 = vsyncpa [#allocation6], 0 }
   0x3   :  { %14 = vsyncpa [#allocation6 + $0x1], 0 }
   0x4   :  { %15 = vsyncpa [#allocation4], 0 }
   0x5   :  { %17 = vsyncpa [#allocation4 + $0x1], 0  ;;  %s754_s15 = smov 0   ;;  %s756_s16 = smov 0  }
   0x6   :  { %s758_s17 = smov 0   ;;  %s760_s18 = smov 0  }
   0x7   :  { %s762_s19 = smov 0   ;;  %s764_s20 = smov 0  }
   0x8 LB: > { %s494_s21 = sadd.s32 4294967295, %s727_s20   ;;  %s495_s22 = sadd.s32 4294967294, %s727_s20   ;;  %s727_s20 = sphi %s764_s20, %s23_s20   ;;  %s723_s19 = sphi %s762_s19, %s912_s19   ;;  %s719_s18 = sphi %s760_s18, %s911_s18   ;;  %s715_s17 = sphi %s758_s17, %s910_s17   ;;  %s711_s16 = sphi %s756_s16, %s909_s16   ;;  %s707_s15 = sphi %s754_s15, %s908_s15  }
   0x9   : > { %s32_s23 = sadd.s32 1, %s723_s19  ;;  %s44_s24 = sadd.s32 1, %s715_s17 }
   0xa   : > { %p33_p0 = scmp.ge.s32.totalorder %s32_s23, 2  ;;  %p51_p1 = scmp.ne.s32.totalorder %s715_s17, %s711_s16 }
   0xb   : > { %p52_p2 = scmp.eq.s32.totalorder %s727_s20, 0  ;;  %p57_p3 = scmp.ne.s32.totalorder %s711_s16, %s707_s15 }
   0xc   : > { %s914_s23 = smov (%p33_p0, %s32_s23), 0  ;;  %p58_p5 = scmp.eq.s32.totalorder %s494_s21, 0 }
   0xd   : > { %902 = sst [smem:[#allocation11_spill]] %s914_s23  ;;  %p795_p4 = por %p52_p2, %p51_p1 }
   0xe   : > { %s39_s26 = ssub.s32 %s723_s19, %s914_s23  ;;  %p163_p6 = scmp.eq.s32.totalorder %s494_s21, 1 }
   0xf   : > { %p42_p7 = scmp.eq.s32.totalorder %s39_s26, 0  ;;  %p801_p8 = por %p58_p5, %p57_p3 }
  0x10   : > { %p805_p9 = por %p163_p6, %p51_p1  ;;  %p169_p10 = scmp.eq.s32.totalorder %s495_s22, 1 }
  0x11   : > { %s810_s29 = scalar_select %p42_p7, %s715_s17, %s44_s24  }
  0x12   : > { %p812_p11 = por %p169_p10, %p57_p3  ;;  %p499_p12 = scmp.ge.s32.totalorder %s727_s20, 2 }
  0x13   : > { %p529_p13 = scmp.lt.s32.totalorder %s727_s20, 2  ;;  %s201_s5 = sand.u32 1, %s715_s17  }
  0x14   : > { %s500_s6 = sshll.u32 %s201_s5, 3  ;;  %s501_s7 = sshll.u32 %s723_s19, 3 }
  0x15   : > { %s210_s10 = scalar_lea.hbm %s896_s0, %s501_s7  ;;  %s205_s11 = scalar_lea.vmem [#allocation2], %s500_s6 }
  0x16   : > { %s214_s12 = sshll.u32 %s205_s11, 4  ;;  %s212_s13 = sshll.u32 %s210_s10, 4  ;;  %s215_s12 = int_to_ptr.vmem [resolvable:$true] %s214_s12  ;;  %s213_s13 = int_to_ptr.hbm [resolvable:$true] %s212_s13 }
  0x17   : > { %p519_p0 = pnand %p529_p13, %p795_p4  ;;  %p504_p1 = scmp.ge.s32.totalorder %s727_s20, 1 }
  0x18   : > { %p239_p2 = scmp.lt.s32.totalorder %s727_s20, 3  ;;  %s202_s14 = scalar_lea.sflag [#allocation3], %s201_s5 }
  0x19   : > { %521 = dma.hbm_to_vmem [thread:$0]  (!%p519_p0), %s213_s13, 128, %s215_s12, %s202_s14  }
  0x1a   : > { %p240_p3 = pnand %p504_p1, %p239_p2  ;;  %s230_s24 = scalar_lea.hbm %s897_s1, %s501_s7 }
  0x1b   : > { %s225_s26 = scalar_lea.vmem [#allocation5], %s500_s6  ;;  %s232_s8 = sshll.u32 %s230_s24, 4  ;;  %s233_s8 = int_to_ptr.hbm [resolvable:$true] %s232_s8 }
  0x1c   : > { %s234_s23 = sshll.u32 %s225_s26, 4  ;;  %s222_s9 = scalar_lea.sflag [#allocation6], %s201_s5  ;;  %s235_s23 = int_to_ptr.vmem [resolvable:$true] %s234_s23 }
  0x1d   : > { %524 = dma.hbm_to_vmem [thread:$0]  (!%p519_p0), %s233_s8, 128, %s235_s23, %s222_s9  }
  0x1e   : > { %243 = sbr.rel (%p240_p3) target bundleno = 95 (0x5f), region = 36  ;;  %s831_s25 = sand.u32 (!%p240_p3), 1, %s711_s16  }
  0x1f   : > { %s834_s10 = sshll.u32 (!%p240_p3), %s831_s25, 3  ;;  %s246_s11 = scalar_lea.sflag (!%p240_p3), [#allocation3], %s831_s25 }
  0x20   : > { %s249_s12 = scalar_lea.vmem (!%p240_p3), [#allocation2], %s834_s10 }
  0x23   : > { %694 = dma.done.wait (%p801_p8), %s246_s11, 128  }
  0x24   : > { %696 = vsyncadd (%p801_p8), %s246_s11, 4294967168  ;;  %s256_s23 = scalar_lea.sflag [#allocation6], %s831_s25  ;;  %s259_s5 = scalar_lea.vmem [#allocation5], %s834_s10 }
  0x25   : > { %698 = dma.done.wait (%p801_p8), %s256_s23, 128  }
  0x26   : > { %700 = vsyncadd (%p801_p8), %s256_s23, 4294967168  ;;  %v302_v0 = vld [vmem:[%s249_s12] sm:$0xff]  ;;  %v303_v1 = vld [vmem:[%s259_s5] sm:$0xff]  ;;  %vm305_vm0 = vcmask 261120   ;;  %s509_s7 = sshll.u32 %s719_s18, 3  ;;  %s295_s26 = scalar_lea.vmem [#allocation7], %s834_s10 }
  0x27   : > { %v304_v2 = vadd.f32 %v303_v1, %v302_v0  ;;  %v337_v30 = vld [vmem:[%s898_s2] sm:$0x1]  ;;  %s361_s24 = scalar_lea.hbm %s900_s4, %s509_s7  ;;  %s363_s8 = sshll.u32 %s295_s26, 4  ;;  %s364_s8 = int_to_ptr.vmem [resolvable:$true] %s363_s8 }
  0x28   : > { %v338_v33 = vld [vmem:[%s899_s3] sm:$0x1]  ;;  %s365_s9 = sshll.u32 %s361_s24, 4  ;;  %s350_s18 = scalar_lea.sflag [#allocation4], %s831_s25  ;;  %s366_s9 = int_to_ptr.hbm [resolvable:$true] %s365_s9 }
  0x29   : > { %v306_v3 = vsel %vm305_vm0, %v304_v2, 0.0  ;;  %v313_v4 = vmul.f32 %v304_v2, %v304_v2  ;;  %s655_s11 = sshra.s32 %s366_s9, 4  ;;  %s661_s10 = scalar_lea.hbm %s900_s4, 16  ;;  %s656_s11 = int_to_ptr.hbm [resolvable:$true] %s655_s11 }
  0x2a   : > { %v307_v5 = vrot.slane %v306_v3, 4  ;;  %s657_s12 = scalar_lea.hbm %s656_s11, 8  ;;  %p662_p7 = scmp.lt.s32.totalorder %s656_s11, %s900_s4 }
  0x2b   : > { %v314_v6 = vsel %vm305_vm0, %v313_v4, 0.0  ;;  %p658_p4 = scmp.ne.s32.totalorder %s656_s11, %s657_s12  ;;  %p663_p8 = scmp.lt.s32.totalorder %s661_s10, %s657_s12 }
  0x2c   : > { %v308_v7 = vadd.f32 %v307_v5, %v306_v3  ;;  %v315_v8 = vrot.slane %v314_v6, 4 }
  0x2d   : > { %p659_p5 = pnand %p658_p4, %p805_p9  ;;  %p664_p10 = por %p663_p8, %p662_p7 }
  0x2e   : > { %v309_v9 = vrot.slane %v308_v7, 2  ;;  %v316_v10 = vadd.f32 %v315_v8, %v314_v6 }
  0x2f   : > { %p660_p6 = pneg %p659_p5 }
  0x30   : > { %v310_v11 = vadd.f32 %v309_v9, %v308_v7  ;;  %v317_v12 = vrot.slane %v316_v10, 2 }
  0x31   : > { %p665_p13 = pnand %p664_p10, %p660_p6 }
  0x32   : > { %v311_v13 = vrot.slane %v310_v11, 1  ;;  %v318_v14 = vadd.f32 %v317_v12, %v316_v10 }
  0x34   : > { %v312_v15 = vadd.f32 %v311_v13, %v310_v11  ;;  %v319_v16 = vrot.slane %v318_v14, 1 }
  0x36   : > { %v320_v17 = vadd.f32 %v319_v16, %v318_v14  ;;  %v321_v18 = vmul.f32 0.125, %v312_v15 }
  0x38   : > { %v322_v19 = vmul.f32 0.125, %v320_v17  ;;  %v323_v20 = vmul.f32 %v321_v18, %v321_v18 }
  0x3a   : > { %v324_v21 = vsub.f32 %v322_v19, %v323_v20 }
  0x3c   : > { %v325_v22 = vmax.f32 %v324_v21, 0.0 }
  0x3e   : > { %v326_v23 = vadd.f32 1e-05, %v325_v22 }
  0x40   : > { %579 = vrsqrt.f32 %v326_v23  ;;  %vm333_vm1 = vweird.f32 %v326_v23 }
  0x46   : > { %v580_v24 = vpop.eup %579 }
  0x47   : > { %v328_v25 = vmul.f32 %v580_v24, %v326_v23  ;;  %vm334_vm2 = vweird.f32 %v580_v24 }
  0x48   : > { %vm335_vm3 = vmor %vm333_vm1, %vm334_vm2 }
  0x49   : > { %v329_v26 = vmul.f32 %v580_v24, %v328_v25 }
  0x4b   : > { %v330_v27 = vmul.f32 0.5, %v329_v26 }
  0x4d   : > { %v331_v28 = vsub.f32 1.5, %v330_v27 }
  0x4f   : > { %v332_v29 = vmul.f32 %v580_v24, %v331_v28 }
  0x51   : > { %v336_v31 = vsel %vm335_vm3, %v580_v24, %v332_v29 }
  0x52   : > { %v339_v32 = vmul.f32 %v337_v30, %v336_v31 }
  0x54   : > { %v340_v34 = vmul.f32 %v339_v32, %v321_v18  ;;  %v342_v35 = vperm.slane %v339_v32, 0 }
  0x56   : > { %v341_v36 = vsub.f32 %v338_v33, %v340_v34  ;;  %v343_v37 = vmul.f32 %v342_v35, %v304_v2 }
  0x58   : > { %v345_v38 = vperm.slane %v341_v36, 0 }
  0x5a   : > { %v347_v39 = vadd.f32 %v345_v38, %v343_v37 }
  0x5c   : > { %348 = vst.msk [vmem:[%s295_s26] sm:$0xff] %vm305_vm0, %v347_v39 }
  0x5d   : > { %668 = shalt.err (!%p665_p13)
}
  0x5e   : > { %516 = dma.vmem_to_hbm [thread:$0]  (%p805_p9), %s364_s8, 128, %s366_s9, %s350_s18  }
  0x5f PF: > { %s377_s25 = sand.u32 1, %s707_s15   ;;  %p526_p0 = pnand %p499_p12, %p812_p11 }
  0x60   : > { %s378_s7 = scalar_lea.sflag [#allocation4], %s377_s25 }
  0x61   : > { %p527_p1 = pneg %p526_p0 }
  0x63   : > { %702 = dma.done.wait (%p527_p1), %s378_s7, 128  }
  0x64   : > { %704 = vsyncadd (%p527_p1), %s378_s7, 4294967168  ;;  %s23_s20 = sadd.s32 1, %s727_s20   ;;  %s907_s28 = sld [smem:[#allocation11_spill]] }
  0x65   : > { %p20_p2 = scmp.ge.s32.totalorder %s23_s20, 4   ;;  %s908_s15 = smov %s711_s16 }
  0x66   : > { %s909_s16 = smov %s715_s17  ;;  %s910_s17 = smov %s810_s29 }
  0x67   : > { %s911_s18 = smov %s723_s19  ;;  %22 = sbr.rel (!%p20_p2) target bundleno = 8 (0x8), region = 100 }
  0x6a   : > { %s912_s19 = smov %s907_s28 }
  0x6c   :  { %384 = vsyncpa [#allocation3], 1 }
  0x6d   :  { %386 = vsyncpa [#allocation3 + $0x1], 1 }
  0x6e   :  { %387 = vsyncpa [#allocation6], 1 }
  0x6f   :  { %389 = vsyncpa [#allocation6 + $0x1], 1 }
  0x70   :  { %390 = vsyncpa [#allocation4], 1 }
  0x71   :  { %392 = vsyncpa [#allocation4 + $0x1], 1 }

</bundles_post_ra>
